<compile_context>
chip_gen: v5e
topology: v5e:2x2
jax: 0.10.0
libtpu: 0.0.40
codegen_flags: <defaults>
</compile_context>

<pallas_src>
import functools

import jax
import jax.numpy as jnp
from jax import lax
from jax.experimental import pallas as pl
from jax.experimental.pallas import tpu as pltpu


# ------------------------------ Pallas kernel -------------------------------


def _melt_feature_kernel(x_ref, w1_ref, b1_ref, w2_ref, b2_ref, o_ref, ypad_ref,
                         *, NB, C, H, W):
    # x_ref  : (NB, C, H*W)  raw row-flattened input block (no padding)
    # w1_ref : (C, C)        1x1 conv weight with BN1 scale folded in   [cmid, cin]
    # b1_ref : (C, 1)        BN1 bias
    # w2_ref : (9, C, C)     3x3 conv weight with BN2 scale folded in   [tap, cout, cmid]
    # b2_ref : (C, 1)        BN2 bias
    # o_ref  : (NB, C, H*W)  output block, same layout as the input
    # ypad_ref: VMEM scratch (C, (H+2)*W + 2) -- zero-padded flat staging for y1
    HW = H * W
    PADN = (H + 2) * W + 2

    # 0/1 lane masks fixing the flat-layout column wrap of the dx=-1 / dx=+1 taps
    # (hoisted out of both loops; masked lanes are exactly the zero-pad positions).
    col = lax.broadcasted_iota(jnp.int32, (C, HW), 1) % W
    mask_l = (col != 0).astype(jnp.float32)       # dx = -1: output column 0 reads pad
    mask_r = (col != W - 1).astype(jnp.float32)   # dx = +1: output column W-1 reads pad

    # Zero the pad lanes of the staging buffer once; the interior store never touches them.
    ypad_ref[:, :W + 1] = jnp.zeros((C, W + 1), jnp.float32)
    ypad_ref[:, W + 1 + HW:PADN] = jnp.zeros((C, W + 1), jnp.float32)

    for b in range(NB):                           # static unroll over the batch block
        # 1x1 conv with BN1 folded in: y1 = W1f @ x + b1
        y1 = jnp.dot(w1_ref[...], x_ref[b],
                     preferred_element_type=jnp.float32) + b1_ref[...]
        # in-kernel "padding": place y1 in the interior of the zero-padded flat buffer
        ypad_ref[:, W + 1:W + 1 + HW] = y1
        # 3x3 conv with BN2 scale folded in: 9 accumulating tap matmuls (no im2col scratch)
        acc = None
        for k in range(9):
            kh, kw = divmod(k, 3)                 # tap (dy, dx) = (kh-1, kw-1)
            off = kh * W + kw
            tap = ypad_ref[:, off:off + HW]
            if kw == 0:
                tap = tap * mask_l
            elif kw == 2:
                tap = tap * mask_r
            d = jnp.dot(w2_ref[k], tap, preferred_element_type=jnp.float32)
            acc = d if acc is None else acc + d
        o_ref[b] = jnp.maximum(acc + b2_ref[...], 0.0).astype(o_ref.dtype)


# --------------------------------- wrapper -----------------------------------


def _fold_bn(gamma, beta, mean, var, eps=1e-5):
    scale = gamma / jnp.sqrt(var + eps)
    bias = beta - mean * scale
    return scale, bias


def _num_tensorcores_per_chip():
    try:
        kind = jax.devices()[0].device_kind.lower()
        if "v7" in kind:
            return 2
    except Exception:
        pass
    return 1


def melt_feature_forward(x_nchw, params):
    """MeltFeature forward. x_nchw: (N, C, H, W) float32 -> (N, C, H, W) float32."""
    N, C, H, W = x_nchw.shape
    HW = H * W
    PADN = (H + 2) * W + 2

    # ---- fold BN1 / BN2 scales into the conv weights (inference mode) ----
    s1, b1 = _fold_bn(params["bn1_gamma"], params["bn1_beta"],
                      params["bn1_mean"], params["bn1_var"])
    s2, b2 = _fold_bn(params["bn2_gamma"], params["bn2_beta"],
                      params["bn2_mean"], params["bn2_var"])

    w1f = (params["conv1_w"][:, :, 0, 0] * s1[:, None]).astype(jnp.float32)      # (Cmid, Cin)
    w2s = params["conv2_w"] * s2[:, None, None, None]                             # (Cout, Cmid, 3, 3)
    w2f = jnp.transpose(w2s, (2, 3, 0, 1)).reshape(9, C, C).astype(jnp.float32)   # (tap, Cout, Cmid)
    b1c = b1[:, None].astype(jnp.float32)                                          # (C, 1)
    b2c = b2[:, None].astype(jnp.float32)                                          # (C, 1)

    # free metadata reshape of contiguous NCHW -> row-flattened layout used by the kernel
    xflat = x_nchw.reshape(N, C, HW).astype(jnp.float32)

    # grid: 1 fat step on single-TC chips (v5e/v6e); batch-parallel steps on v7x (2 TCs)
    n_tc = _num_tensorcores_per_chip()
    if n_tc > 1 and N > 1:
        steps = n_tc if N % n_tc == 0 else N
    else:
        steps = 1
    NB = N // steps

    kernel = functools.partial(_melt_feature_kernel, NB=NB, C=C, H=H, W=W)

    # TODO(synk): add a spatial (lane) tiling grid axis + bf16 staging before using this at
    # production C/H/W so blocks and the staging buffer stay within the v7x VMEM budget.
    out_flat = pl.pallas_call(
        kernel,
        out_shape=jax.ShapeDtypeStruct((N, C, HW), jnp.float32),
        grid_spec=pltpu.PrefetchScalarGridSpec(
            num_scalar_prefetch=0,
            grid=(steps,),
            in_specs=[
                pl.BlockSpec((NB, C, HW), lambda n: (n, 0, 0)),
                pl.BlockSpec((C, C), lambda n: (0, 0)),
                pl.BlockSpec((C, 1), lambda n: (0, 0)),
                pl.BlockSpec((9, C, C), lambda n: (0, 0, 0)),
                pl.BlockSpec((C, 1), lambda n: (0, 0)),
            ],
            out_specs=pl.BlockSpec((NB, C, HW), lambda n: (n, 0, 0)),
            scratch_shapes=[pltpu.VMEM((C, PADN), jnp.float32)],
        ),
        compiler_params=pltpu.CompilerParams(
            dimension_semantics=("parallel",)),
    )(xflat, w1f, b1c, w2f, b2c)

    # free metadata reshape back to NCHW (no garbage columns, no slicing)
    return out_flat.reshape(N, C, H, W)


# -------------------------------- reference ----------------------------------


def melt_feature_reference(x_nchw, params):
    """Plain-JAX (XLA) NCHW reference for correctness checking."""
    s1, b1 = _fold_bn(params["bn1_gamma"], params["bn1_beta"],
                      params["bn1_mean"], params["bn1_var"])
    s2, b2 = _fold_bn(params["bn2_gamma"], params["bn2_beta"],
                      params["bn2_mean"], params["bn2_var"])

    y = lax.conv_general_dilated(
        x_nchw, params["conv1_w"], window_strides=(1, 1), padding="VALID",
        dimension_numbers=("NCHW", "OIHW", "NCHW"))
    y = y * s1[None, :, None, None] + b1[None, :, None, None]

    y = lax.conv_general_dilated(
        y, params["conv2_w"], window_strides=(1, 1), padding=((1, 1), (1, 1)),
        dimension_numbers=("NCHW", "OIHW", "NCHW"))
    y = y * s2[None, :, None, None] + b2[None, :, None, None]
    return jnp.maximum(y, 0.0)


# ----------------------------------- main -------------------------------------


if __name__ == "__main__":
    # MeltFeature(channel=8, num_ins=2); channels_per_group is unused in forward.
    N, C, H, W = 2, 8, 16, 16

    key = jax.random.PRNGKey(0)
    keys = jax.random.split(key, 9)

    params = {
        "conv1_w": 0.1 * jax.random.normal(keys[0], (C, C, 1, 1), jnp.float32),
        "conv2_w": 0.1 * jax.random.normal(keys[1], (C, C, 3, 3), jnp.float32),
        "bn1_gamma": 1.0 + 0.1 * jax.random.normal(keys[2], (C,), jnp.float32),
        "bn1_beta": 0.1 * jax.random.normal(keys[3], (C,), jnp.float32),
        "bn1_mean": 0.1 * jax.random.normal(keys[4], (C,), jnp.float32),
        "bn1_var": jnp.abs(1.0 + 0.1 * jax.random.normal(keys[5], (C,), jnp.float32)),
        "bn2_gamma": 1.0 + 0.1 * jax.random.normal(keys[6], (C,), jnp.float32),
        "bn2_beta": 0.1 * jax.random.normal(keys[7], (C,), jnp.float32),
        "bn2_mean": 0.1 * jax.random.normal(keys[8], (C,), jnp.float32),
        "bn2_var": jnp.abs(1.0 + 0.05 * jnp.arange(C, dtype=jnp.float32)),
    }

    x = jax.random.normal(jax.random.PRNGKey(42), (N, C, H, W), jnp.float32)

    out = jax.block_until_ready(melt_feature_forward(x, params))
    ref = jax.block_until_ready(melt_feature_reference(x, params))

    assert out.shape == (N, C, H, W), out.shape
    max_err = float(jnp.max(jnp.abs(out - ref)))
    assert max_err < 2e-4, f"mismatch vs reference: {max_err}"

    print("KERNEL_OK")
</pallas_src>

<mosaic_0001>
module attributes {stable_mosaic.version = 11 : i64} {
  func.func @_melt_feature_kernel(%arg0: i32, %arg1: memref<2x8x256xf32, #tpu.memory_space<vmem>>, %arg2: memref<8x8xf32, #tpu.memory_space<vmem>>, %arg3: memref<8x1xf32, #tpu.memory_space<vmem>>, %arg4: memref<9x8x8xf32, #tpu.memory_space<vmem>>, %arg5: memref<8x1xf32, #tpu.memory_space<vmem>>, %arg6: memref<2x8x256xf32, #tpu.memory_space<vmem>>, %arg7: memref<8x290xf32, #tpu.memory_space<vmem>>) attributes {dimension_semantics = [#tpu.dimension_semantics<parallel>], iteration_bounds = array<i64: 1>, scalar_prefetch = 0 : i64, scratch_operands = 1 : i64, tpu.core_type = #tpu.core_type<tc>, window_params = [{transform_indices = @transform_0, window_bounds = array<i64: 2, 8, 256>}, {pipeline_mode = #tpu.pipeline_mode<synchronous>, transform_indices = @transform_1, window_bounds = array<i64: 8, 8>}, {pipeline_mode = #tpu.pipeline_mode<synchronous>, transform_indices = @transform_2, window_bounds = array<i64: 8, 1>}, {pipeline_mode = #tpu.pipeline_mode<synchronous>, transform_indices = @transform_3, window_bounds = array<i64: 9, 8, 8>}, {pipeline_mode = #tpu.pipeline_mode<synchronous>, transform_indices = @transform_4, window_bounds = array<i64: 8, 1>}, {transform_indices = @transform_5, window_bounds = array<i64: 2, 8, 256>}]} {
    %0 = tpu.iota {dimensions = array<i32: 1>} : vector<8x256xi32>
    %c16_i32 = arith.constant 16 : i32
    %c0_i32 = arith.constant 0 : i32
    %1 = arith.cmpi eq, %c16_i32, %c0_i32 : i32
    %c1_i32 = arith.constant 1 : i32
    %2 = arith.select %1, %c1_i32, %c16_i32 : i32
    %3 = vector.broadcast %2 : i32 to vector<8x256xi32>
    %4 = arith.remsi %0, %3 : vector<8x256xi32>
    %c0_i32_0 = arith.constant 0 : i32
    %5 = vector.broadcast %c0_i32_0 : i32 to vector<8x256xi32>
    %6 = arith.cmpi ne, %4, %5 : vector<8x256xi32>
    %c0_i32_1 = arith.constant 0 : i32
    %7 = vector.broadcast %c0_i32_1 : i32 to vector<8x256xi32>
    %8 = arith.cmpi slt, %4, %7 : vector<8x256xi32>
    %c0_i32_2 = arith.constant 0 : i32
    %9 = arith.cmpi slt, %2, %c0_i32_2 : i32
    %10 = vector.broadcast %9 : i1 to vector<8x256xi1>
    %11 = vector.broadcast %10 : vector<8x256xi1> to vector<8x256xi1>
    %12 = arith.xori %8, %11 : vector<8x256xi1>
    %13 = arith.andi %12, %6 : vector<8x256xi1>
    %14 = vector.broadcast %2 : i32 to vector<8x256xi32>
    %15 = arith.addi %4, %14 : vector<8x256xi32>
    %16 = arith.select %13, %15, %4 : vector<8x256xi1>, vector<8x256xi32>
    %c0_i32_3 = arith.constant 0 : i32
    %17 = vector.broadcast %c0_i32_3 : i32 to vector<8x256xi32>
    %18 = arith.cmpi ne, %16, %17 : vector<8x256xi32>
    %19 = arith.extui %18 : vector<8x256xi1> to vector<8x256xi32>
    %20 = arith.sitofp %19 : vector<8x256xi32> to vector<8x256xf32>
    %c15_i32 = arith.constant 15 : i32
    %21 = vector.broadcast %c15_i32 : i32 to vector<8x256xi32>
    %22 = arith.cmpi ne, %16, %21 : vector<8x256xi32>
    %23 = arith.extui %22 : vector<8x256xi1> to vector<8x256xi32>
    %24 = arith.sitofp %23 : vector<8x256xi32> to vector<8x256xf32>
    %cst = arith.constant 0.000000e+00 : f32
    %25 = vector.broadcast %cst : f32 to vector<8x17xf32>
    %c0 = arith.constant 0 : index
    %c0_4 = arith.constant 0 : index
    %26 = vector.load %arg7[%c0, %c0_4] : memref<8x290xf32, #tpu.memory_space<vmem>>, vector<8x17xf32>
    tpu.vector_store %arg7[%c0, %c0_4], %25 {strides = array<i32>} : memref<8x290xf32, #tpu.memory_space<vmem>>, vector<8x17xf32>,
    %cst_5 = arith.constant 0.000000e+00 : f32
    %27 = vector.broadcast %cst_5 : f32 to vector<8x17xf32>
    %c0_6 = arith.constant 0 : index
    %c273 = arith.constant 273 : index
    %28 = vector.load %arg7[%c0_6, %c273] : memref<8x290xf32, #tpu.memory_space<vmem>>, vector<8x17xf32>
    tpu.vector_store %arg7[%c0_6, %c273], %27 {strides = array<i32>} : memref<8x290xf32, #tpu.memory_space<vmem>>, vector<8x17xf32>,
    %c0_7 = arith.constant 0 : index
    %c0_8 = arith.constant 0 : index
    %29 = vector.load %arg2[%c0_7, %c0_8] : memref<8x8xf32, #tpu.memory_space<vmem>>, vector<8x8xf32>
    %c0_9 = arith.constant 0 : index
    %c0_10 = arith.constant 0 : index
    %c0_11 = arith.constant 0 : index
    %30 = vector.load %arg1[%c0_9, %c0_10, %c0_11] : memref<2x8x256xf32, #tpu.memory_space<vmem>>, vector<1x8x256xf32>
    %31 = vector.shape_cast %30 : vector<1x8x256xf32> to vector<8x256xf32>
    %cst_12 = arith.constant dense<0.000000e+00> : vector<8x256xf32>
    %32 = tpu.matmul %29, %31, %cst_12 {dimension_numbers = #tpu.dot_dimension_numbers<[1], [0], [0], [1], [0, 0, 1, 1], [], []>} : vector<8x8xf32>, vector<8x256xf32>, vector<8x256xf32> -> vector<8x256xf32>
    %c0_13 = arith.constant 0 : index
    %c0_14 = arith.constant 0 : index
    %33 = vector.load %arg3[%c0_13, %c0_14] : memref<8x1xf32, #tpu.memory_space<vmem>>, vector<8x1xf32>
    %34 = vector.broadcast %33 : vector<8x1xf32> to vector<8x256xf32>
    %35 = arith.addf %32, %34 : vector<8x256xf32>
    %c0_15 = arith.constant 0 : index
    %c17 = arith.constant 17 : index
    %36 = vector.load %arg7[%c0_15, %c17] : memref<8x290xf32, #tpu.memory_space<vmem>>, vector<8x256xf32>
    tpu.vector_store %arg7[%c0_15, %c17], %35 {strides = array<i32>} : memref<8x290xf32, #tpu.memory_space<vmem>>, vector<8x256xf32>,
    %c0_16 = arith.constant 0 : index
    %c0_17 = arith.constant 0 : index
    %37 = vector.load %arg7[%c0_16, %c0_17] : memref<8x290xf32, #tpu.memory_space<vmem>>, vector<8x256xf32>
    %38 = arith.mulf %37, %20 : vector<8x256xf32>
    %c0_18 = arith.constant 0 : index
    %c0_19 = arith.constant 0 : index
    %c0_20 = arith.constant 0 : index
    %39 = vector.load %arg4[%c0_18, %c0_19, %c0_20] : memref<9x8x8xf32, #tpu.memory_space<vmem>>, vector<1x8x8xf32>
    %40 = vector.shape_cast %39 : vector<1x8x8xf32> to vector<8x8xf32>
    %cst_21 = arith.constant dense<0.000000e+00> : vector<8x256xf32>
    %41 = tpu.matmul %40, %38, %cst_21 {dimension_numbers = #tpu.dot_dimension_numbers<[1], [0], [0], [1], [0, 0, 1, 1], [], []>} : vector<8x8xf32>, vector<8x256xf32>, vector<8x256xf32> -> vector<8x256xf32>
    %c0_22 = arith.constant 0 : index
    %c1 = arith.constant 1 : index
    %42 = vector.load %arg7[%c0_22, %c1] : memref<8x290xf32, #tpu.memory_space<vmem>>, vector<8x256xf32>
    %c1_23 = arith.constant 1 : index
    %c0_24 = arith.constant 0 : index
    %c0_25 = arith.constant 0 : index
    %43 = vector.load %arg4[%c1_23, %c0_24, %c0_25] : memref<9x8x8xf32, #tpu.memory_space<vmem>>, vector<1x8x8xf32>
    %44 = vector.shape_cast %43 : vector<1x8x8xf32> to vector<8x8xf32>
    %cst_26 = arith.constant dense<0.000000e+00> : vector<8x256xf32>
    %45 = tpu.matmul %44, %42, %cst_26 {dimension_numbers = #tpu.dot_dimension_numbers<[1], [0], [0], [1], [0, 0, 1, 1], [], []>} : vector<8x8xf32>, vector<8x256xf32>, vector<8x256xf32> -> vector<8x256xf32>
    %46 = arith.addf %41, %45 : vector<8x256xf32>
    %c0_27 = arith.constant 0 : index
    %c2 = arith.constant 2 : index
    %47 = vector.load %arg7[%c0_27, %c2] : memref<8x290xf32, #tpu.memory_space<vmem>>, vector<8x256xf32>
    %48 = arith.mulf %47, %24 : vector<8x256xf32>
    %c2_28 = arith.constant 2 : index
    %c0_29 = arith.constant 0 : index
    %c0_30 = arith.constant 0 : index
    %49 = vector.load %arg4[%c2_28, %c0_29, %c0_30] : memref<9x8x8xf32, #tpu.memory_space<vmem>>, vector<1x8x8xf32>
    %50 = vector.shape_cast %49 : vector<1x8x8xf32> to vector<8x8xf32>
    %cst_31 = arith.constant dense<0.000000e+00> : vector<8x256xf32>
    %51 = tpu.matmul %50, %48, %cst_31 {dimension_numbers = #tpu.dot_dimension_numbers<[1], [0], [0], [1], [0, 0, 1, 1], [], []>} : vector<8x8xf32>, vector<8x256xf32>, vector<8x256xf32> -> vector<8x256xf32>
    %52 = arith.addf %46, %51 : vector<8x256xf32>
    %c0_32 = arith.constant 0 : index
    %c16 = arith.constant 16 : index
    %53 = vector.load %arg7[%c0_32, %c16] : memref<8x290xf32, #tpu.memory_space<vmem>>, vector<8x256xf32>
    %54 = arith.mulf %53, %20 : vector<8x256xf32>
    %c3 = arith.constant 3 : index
    %c0_33 = arith.constant 0 : index
    %c0_34 = arith.constant 0 : index
    %55 = vector.load %arg4[%c3, %c0_33, %c0_34] : memref<9x8x8xf32, #tpu.memory_space<vmem>>, vector<1x8x8xf32>
    %56 = vector.shape_cast %55 : vector<1x8x8xf32> to vector<8x8xf32>
    %cst_35 = arith.constant dense<0.000000e+00> : vector<8x256xf32>
    %57 = tpu.matmul %56, %54, %cst_35 {dimension_numbers = #tpu.dot_dimension_numbers<[1], [0], [0], [1], [0, 0, 1, 1], [], []>} : vector<8x8xf32>, vector<8x256xf32>, vector<8x256xf32> -> vector<8x256xf32>
    %58 = arith.addf %52, %57 : vector<8x256xf32>
    %c0_36 = arith.constant 0 : index
    %c17_37 = arith.constant 17 : index
    %59 = vector.load %arg7[%c0_36, %c17_37] : memref<8x290xf32, #tpu.memory_space<vmem>>, vector<8x256xf32>
    %c4 = arith.constant 4 : index
    %c0_38 = arith.constant 0 : index
    %c0_39 = arith.constant 0 : index
    %60 = vector.load %arg4[%c4, %c0_38, %c0_39] : memref<9x8x8xf32, #tpu.memory_space<vmem>>, vector<1x8x8xf32>
    %61 = vector.shape_cast %60 : vector<1x8x8xf32> to vector<8x8xf32>
    %cst_40 = arith.constant dense<0.000000e+00> : vector<8x256xf32>
    %62 = tpu.matmul %61, %59, %cst_40 {dimension_numbers = #tpu.dot_dimension_numbers<[1], [0], [0], [1], [0, 0, 1, 1], [], []>} : vector<8x8xf32>, vector<8x256xf32>, vector<8x256xf32> -> vector<8x256xf32>
    %63 = arith.addf %58, %62 : vector<8x256xf32>
    %c0_41 = arith.constant 0 : index
    %c18 = arith.constant 18 : index
    %64 = vector.load %arg7[%c0_41, %c18] : memref<8x290xf32, #tpu.memory_space<vmem>>, vector<8x256xf32>
    %65 = arith.mulf %64, %24 : vector<8x256xf32>
    %c5 = arith.constant 5 : index
    %c0_42 = arith.constant 0 : index
    %c0_43 = arith.constant 0 : index
    %66 = vector.load %arg4[%c5, %c0_42, %c0_43] : memref<9x8x8xf32, #tpu.memory_space<vmem>>, vector<1x8x8xf32>
    %67 = vector.shape_cast %66 : vector<1x8x8xf32> to vector<8x8xf32>
    %cst_44 = arith.constant dense<0.000000e+00> : vector<8x256xf32>
    %68 = tpu.matmul %67, %65, %cst_44 {dimension_numbers = #tpu.dot_dimension_numbers<[1], [0], [0], [1], [0, 0, 1, 1], [], []>} : vector<8x8xf32>, vector<8x256xf32>, vector<8x256xf32> -> vector<8x256xf32>
    %69 = arith.addf %63, %68 : vector<8x256xf32>
    %c0_45 = arith.constant 0 : index
    %c32 = arith.constant 32 : index
    %70 = vector.load %arg7[%c0_45, %c32] : memref<8x290xf32, #tpu.memory_space<vmem>>, vector<8x256xf32>
    %71 = arith.mulf %70, %20 : vector<8x256xf32>
    %c6 = arith.constant 6 : index
    %c0_46 = arith.constant 0 : index
    %c0_47 = arith.constant 0 : index
    %72 = vector.load %arg4[%c6, %c0_46, %c0_47] : memref<9x8x8xf32, #tpu.memory_space<vmem>>, vector<1x8x8xf32>
    %73 = vector.shape_cast %72 : vector<1x8x8xf32> to vector<8x8xf32>
    %cst_48 = arith.constant dense<0.000000e+00> : vector<8x256xf32>
    %74 = tpu.matmul %73, %71, %cst_48 {dimension_numbers = #tpu.dot_dimension_numbers<[1], [0], [0], [1], [0, 0, 1, 1], [], []>} : vector<8x8xf32>, vector<8x256xf32>, vector<8x256xf32> -> vector<8x256xf32>
    %75 = arith.addf %69, %74 : vector<8x256xf32>
    %c0_49 = arith.constant 0 : index
    %c33 = arith.constant 33 : index
    %76 = vector.load %arg7[%c0_49, %c33] : memref<8x290xf32, #tpu.memory_space<vmem>>, vector<8x256xf32>
    %c7 = arith.constant 7 : index
    %c0_50 = arith.constant 0 : index
    %c0_51 = arith.constant 0 : index
    %77 = vector.load %arg4[%c7, %c0_50, %c0_51] : memref<9x8x8xf32, #tpu.memory_space<vmem>>, vector<1x8x8xf32>
    %78 = vector.shape_cast %77 : vector<1x8x8xf32> to vector<8x8xf32>
    %cst_52 = arith.constant dense<0.000000e+00> : vector<8x256xf32>
    %79 = tpu.matmul %78, %76, %cst_52 {dimension_numbers = #tpu.dot_dimension_numbers<[1], [0], [0], [1], [0, 0, 1, 1], [], []>} : vector<8x8xf32>, vector<8x256xf32>, vector<8x256xf32> -> vector<8x256xf32>
    %80 = arith.addf %75, %79 : vector<8x256xf32>
    %c0_53 = arith.constant 0 : index
    %c34 = arith.constant 34 : index
    %81 = vector.load %arg7[%c0_53, %c34] : memref<8x290xf32, #tpu.memory_space<vmem>>, vector<8x256xf32>
    %82 = arith.mulf %81, %24 : vector<8x256xf32>
    %c8 = arith.constant 8 : index
    %c0_54 = arith.constant 0 : index
    %c0_55 = arith.constant 0 : index
    %83 = vector.load %arg4[%c8, %c0_54, %c0_55] : memref<9x8x8xf32, #tpu.memory_space<vmem>>, vector<1x8x8xf32>
    %84 = vector.shape_cast %83 : vector<1x8x8xf32> to vector<8x8xf32>
    %cst_56 = arith.constant dense<0.000000e+00> : vector<8x256xf32>
    %85 = tpu.matmul %84, %82, %cst_56 {dimension_numbers = #tpu.dot_dimension_numbers<[1], [0], [0], [1], [0, 0, 1, 1], [], []>} : vector<8x8xf32>, vector<8x256xf32>, vector<8x256xf32> -> vector<8x256xf32>
    %86 = arith.addf %80, %85 : vector<8x256xf32>
    %c0_57 = arith.constant 0 : index
    %c0_58 = arith.constant 0 : index
    %87 = vector.load %arg5[%c0_57, %c0_58] : memref<8x1xf32, #tpu.memory_space<vmem>>, vector<8x1xf32>
    %88 = vector.broadcast %87 : vector<8x1xf32> to vector<8x256xf32>
    %89 = arith.addf %86, %88 : vector<8x256xf32>
    %cst_59 = arith.constant 0.000000e+00 : f32
    %90 = vector.broadcast %cst_59 : f32 to vector<8x256xf32>
    %91 = arith.maximumf %89, %90 : vector<8x256xf32>
    %c0_60 = arith.constant 0 : index
    %c0_61 = arith.constant 0 : index
    %c0_62 = arith.constant 0 : index
    %92 = vector.load %arg6[%c0_60, %c0_61, %c0_62] : memref<2x8x256xf32, #tpu.memory_space<vmem>>, vector<1x8x256xf32>
    %93 = vector.shape_cast %92 : vector<1x8x256xf32> to vector<8x256xf32>
    %94 = vector.shape_cast %91 : vector<8x256xf32> to vector<1x8x256xf32>
    tpu.vector_store %arg6[%c0_60, %c0_61, %c0_62], %94 {strides = array<i32>} : memref<2x8x256xf32, #tpu.memory_space<vmem>>, vector<1x8x256xf32>,
    %c0_63 = arith.constant 0 : index
    %c0_64 = arith.constant 0 : index
    %95 = vector.load %arg2[%c0_63, %c0_64] : memref<8x8xf32, #tpu.memory_space<vmem>>, vector<8x8xf32>
    %c1_65 = arith.constant 1 : index
    %c0_66 = arith.constant 0 : index
    %c0_67 = arith.constant 0 : index
    %96 = vector.load %arg1[%c1_65, %c0_66, %c0_67] : memref<2x8x256xf32, #tpu.memory_space<vmem>>, vector<1x8x256xf32>
    %97 = vector.shape_cast %96 : vector<1x8x256xf32> to vector<8x256xf32>
    %cst_68 = arith.constant dense<0.000000e+00> : vector<8x256xf32>
    %98 = tpu.matmul %95, %97, %cst_68 {dimension_numbers = #tpu.dot_dimension_numbers<[1], [0], [0], [1], [0, 0, 1, 1], [], []>} : vector<8x8xf32>, vector<8x256xf32>, vector<8x256xf32> -> vector<8x256xf32>
    %c0_69 = arith.constant 0 : index
    %c0_70 = arith.constant 0 : index
    %99 = vector.load %arg3[%c0_69, %c0_70] : memref<8x1xf32, #tpu.memory_space<vmem>>, vector<8x1xf32>
    %100 = vector.broadcast %99 : vector<8x1xf32> to vector<8x256xf32>
    %101 = arith.addf %98, %100 : vector<8x256xf32>
    %c0_71 = arith.constant 0 : index
    %c17_72 = arith.constant 17 : index
    %102 = vector.load %arg7[%c0_71, %c17_72] : memref<8x290xf32, #tpu.memory_space<vmem>>, vector<8x256xf32>
    tpu.vector_store %arg7[%c0_71, %c17_72], %101 {strides = array<i32>} : memref<8x290xf32, #tpu.memory_space<vmem>>, vector<8x256xf32>,
    %c0_73 = arith.constant 0 : index
    %c0_74 = arith.constant 0 : index
    %103 = vector.load %arg7[%c0_73, %c0_74] : memref<8x290xf32, #tpu.memory_space<vmem>>, vector<8x256xf32>
    %104 = arith.mulf %103, %20 : vector<8x256xf32>
    %c0_75 = arith.constant 0 : index
    %c0_76 = arith.constant 0 : index
    %c0_77 = arith.constant 0 : index
    %105 = vector.load %arg4[%c0_75, %c0_76, %c0_77] : memref<9x8x8xf32, #tpu.memory_space<vmem>>, vector<1x8x8xf32>
    %106 = vector.shape_cast %105 : vector<1x8x8xf32> to vector<8x8xf32>
    %cst_78 = arith.constant dense<0.000000e+00> : vector<8x256xf32>
    %107 = tpu.matmul %106, %104, %cst_78 {dimension_numbers = #tpu.dot_dimension_numbers<[1], [0], [0], [1], [0, 0, 1, 1], [], []>} : vector<8x8xf32>, vector<8x256xf32>, vector<8x256xf32> -> vector<8x256xf32>
    %c0_79 = arith.constant 0 : index
    %c1_80 = arith.constant 1 : index
    %108 = vector.load %arg7[%c0_79, %c1_80] : memref<8x290xf32, #tpu.memory_space<vmem>>, vector<8x256xf32>
    %c1_81 = arith.constant 1 : index
    %c0_82 = arith.constant 0 : index
    %c0_83 = arith.constant 0 : index
    %109 = vector.load %arg4[%c1_81, %c0_82, %c0_83] : memref<9x8x8xf32, #tpu.memory_space<vmem>>, vector<1x8x8xf32>
    %110 = vector.shape_cast %109 : vector<1x8x8xf32> to vector<8x8xf32>
    %cst_84 = arith.constant dense<0.000000e+00> : vector<8x256xf32>
    %111 = tpu.matmul %110, %108, %cst_84 {dimension_numbers = #tpu.dot_dimension_numbers<[1], [0], [0], [1], [0, 0, 1, 1], [], []>} : vector<8x8xf32>, vector<8x256xf32>, vector<8x256xf32> -> vector<8x256xf32>
    %112 = arith.addf %107, %111 : vector<8x256xf32>
    %c0_85 = arith.constant 0 : index
    %c2_86 = arith.constant 2 : index
    %113 = vector.load %arg7[%c0_85, %c2_86] : memref<8x290xf32, #tpu.memory_space<vmem>>, vector<8x256xf32>
    %114 = arith.mulf %113, %24 : vector<8x256xf32>
    %c2_87 = arith.constant 2 : index
    %c0_88 = arith.constant 0 : index
    %c0_89 = arith.constant 0 : index
    %115 = vector.load %arg4[%c2_87, %c0_88, %c0_89] : memref<9x8x8xf32, #tpu.memory_space<vmem>>, vector<1x8x8xf32>
    %116 = vector.shape_cast %115 : vector<1x8x8xf32> to vector<8x8xf32>
    %cst_90 = arith.constant dense<0.000000e+00> : vector<8x256xf32>
    %117 = tpu.matmul %116, %114, %cst_90 {dimension_numbers = #tpu.dot_dimension_numbers<[1], [0], [0], [1], [0, 0, 1, 1], [], []>} : vector<8x8xf32>, vector<8x256xf32>, vector<8x256xf32> -> vector<8x256xf32>
    %118 = arith.addf %112, %117 : vector<8x256xf32>
    %c0_91 = arith.constant 0 : index
    %c16_92 = arith.constant 16 : index
    %119 = vector.load %arg7[%c0_91, %c16_92] : memref<8x290xf32, #tpu.memory_space<vmem>>, vector<8x256xf32>
    %120 = arith.mulf %119, %20 : vector<8x256xf32>
    %c3_93 = arith.constant 3 : index
    %c0_94 = arith.constant 0 : index
    %c0_95 = arith.constant 0 : index
    %121 = vector.load %arg4[%c3_93, %c0_94, %c0_95] : memref<9x8x8xf32, #tpu.memory_space<vmem>>, vector<1x8x8xf32>
    %122 = vector.shape_cast %121 : vector<1x8x8xf32> to vector<8x8xf32>
    %cst_96 = arith.constant dense<0.000000e+00> : vector<8x256xf32>
    %123 = tpu.matmul %122, %120, %cst_96 {dimension_numbers = #tpu.dot_dimension_numbers<[1], [0], [0], [1], [0, 0, 1, 1], [], []>} : vector<8x8xf32>, vector<8x256xf32>, vector<8x256xf32> -> vector<8x256xf32>
    %124 = arith.addf %118, %123 : vector<8x256xf32>
    %c0_97 = arith.constant 0 : index
    %c17_98 = arith.constant 17 : index
    %125 = vector.load %arg7[%c0_97, %c17_98] : memref<8x290xf32, #tpu.memory_space<vmem>>, vector<8x256xf32>
    %c4_99 = arith.constant 4 : index
    %c0_100 = arith.constant 0 : index
    %c0_101 = arith.constant 0 : index
    %126 = vector.load %arg4[%c4_99, %c0_100, %c0_101] : memref<9x8x8xf32, #tpu.memory_space<vmem>>, vector<1x8x8xf32>
    %127 = vector.shape_cast %126 : vector<1x8x8xf32> to vector<8x8xf32>
    %cst_102 = arith.constant dense<0.000000e+00> : vector<8x256xf32>
    %128 = tpu.matmul %127, %125, %cst_102 {dimension_numbers = #tpu.dot_dimension_numbers<[1], [0], [0], [1], [0, 0, 1, 1], [], []>} : vector<8x8xf32>, vector<8x256xf32>, vector<8x256xf32> -> vector<8x256xf32>
    %129 = arith.addf %124, %128 : vector<8x256xf32>
    %c0_103 = arith.constant 0 : index
    %c18_104 = arith.constant 18 : index
    %130 = vector.load %arg7[%c0_103, %c18_104] : memref<8x290xf32, #tpu.memory_space<vmem>>, vector<8x256xf32>
    %131 = arith.mulf %130, %24 : vector<8x256xf32>
    %c5_105 = arith.constant 5 : index
    %c0_106 = arith.constant 0 : index
    %c0_107 = arith.constant 0 : index
    %132 = vector.load %arg4[%c5_105, %c0_106, %c0_107] : memref<9x8x8xf32, #tpu.memory_space<vmem>>, vector<1x8x8xf32>
    %133 = vector.shape_cast %132 : vector<1x8x8xf32> to vector<8x8xf32>
    %cst_108 = arith.constant dense<0.000000e+00> : vector<8x256xf32>
    %134 = tpu.matmul %133, %131, %cst_108 {dimension_numbers = #tpu.dot_dimension_numbers<[1], [0], [0], [1], [0, 0, 1, 1], [], []>} : vector<8x8xf32>, vector<8x256xf32>, vector<8x256xf32> -> vector<8x256xf32>
    %135 = arith.addf %129, %134 : vector<8x256xf32>
    %c0_109 = arith.constant 0 : index
    %c32_110 = arith.constant 32 : index
    %136 = vector.load %arg7[%c0_109, %c32_110] : memref<8x290xf32, #tpu.memory_space<vmem>>, vector<8x256xf32>
    %137 = arith.mulf %136, %20 : vector<8x256xf32>
    %c6_111 = arith.constant 6 : index
    %c0_112 = arith.constant 0 : index
    %c0_113 = arith.constant 0 : index
    %138 = vector.load %arg4[%c6_111, %c0_112, %c0_113] : memref<9x8x8xf32, #tpu.memory_space<vmem>>, vector<1x8x8xf32>
    %139 = vector.shape_cast %138 : vector<1x8x8xf32> to vector<8x8xf32>
    %cst_114 = arith.constant dense<0.000000e+00> : vector<8x256xf32>
    %140 = tpu.matmul %139, %137, %cst_114 {dimension_numbers = #tpu.dot_dimension_numbers<[1], [0], [0], [1], [0, 0, 1, 1], [], []>} : vector<8x8xf32>, vector<8x256xf32>, vector<8x256xf32> -> vector<8x256xf32>
    %141 = arith.addf %135, %140 : vector<8x256xf32>
    %c0_115 = arith.constant 0 : index
    %c33_116 = arith.constant 33 : index
    %142 = vector.load %arg7[%c0_115, %c33_116] : memref<8x290xf32, #tpu.memory_space<vmem>>, vector<8x256xf32>
    %c7_117 = arith.constant 7 : index
    %c0_118 = arith.constant 0 : index
    %c0_119 = arith.constant 0 : index
    %143 = vector.load %arg4[%c7_117, %c0_118, %c0_119] : memref<9x8x8xf32, #tpu.memory_space<vmem>>, vector<1x8x8xf32>
    %144 = vector.shape_cast %143 : vector<1x8x8xf32> to vector<8x8xf32>
    %cst_120 = arith.constant dense<0.000000e+00> : vector<8x256xf32>
    %145 = tpu.matmul %144, %142, %cst_120 {dimension_numbers = #tpu.dot_dimension_numbers<[1], [0], [0], [1], [0, 0, 1, 1], [], []>} : vector<8x8xf32>, vector<8x256xf32>, vector<8x256xf32> -> vector<8x256xf32>
    %146 = arith.addf %141, %145 : vector<8x256xf32>
    %c0_121 = arith.constant 0 : index
    %c34_122 = arith.constant 34 : index
    %147 = vector.load %arg7[%c0_121, %c34_122] : memref<8x290xf32, #tpu.memory_space<vmem>>, vector<8x256xf32>
    %148 = arith.mulf %147, %24 : vector<8x256xf32>
    %c8_123 = arith.constant 8 : index
    %c0_124 = arith.constant 0 : index
    %c0_125 = arith.constant 0 : index
    %149 = vector.load %arg4[%c8_123, %c0_124, %c0_125] : memref<9x8x8xf32, #tpu.memory_space<vmem>>, vector<1x8x8xf32>
    %150 = vector.shape_cast %149 : vector<1x8x8xf32> to vector<8x8xf32>
    %cst_126 = arith.constant dense<0.000000e+00> : vector<8x256xf32>
    %151 = tpu.matmul %150, %148, %cst_126 {dimension_numbers = #tpu.dot_dimension_numbers<[1], [0], [0], [1], [0, 0, 1, 1], [], []>} : vector<8x8xf32>, vector<8x256xf32>, vector<8x256xf32> -> vector<8x256xf32>
    %152 = arith.addf %146, %151 : vector<8x256xf32>
    %c0_127 = arith.constant 0 : index
    %c0_128 = arith.constant 0 : index
    %153 = vector.load %arg5[%c0_127, %c0_128] : memref<8x1xf32, #tpu.memory_space<vmem>>, vector<8x1xf32>
    %154 = vector.broadcast %153 : vector<8x1xf32> to vector<8x256xf32>
    %155 = arith.addf %152, %154 : vector<8x256xf32>
    %cst_129 = arith.constant 0.000000e+00 : f32
    %156 = vector.broadcast %cst_129 : f32 to vector<8x256xf32>
    %157 = arith.maximumf %155, %156 : vector<8x256xf32>
    %c1_130 = arith.constant 1 : index
    %c0_131 = arith.constant 0 : index
    %c0_132 = arith.constant 0 : index
    %158 = vector.load %arg6[%c1_130, %c0_131, %c0_132] : memref<2x8x256xf32, #tpu.memory_space<vmem>>, vector<1x8x256xf32>
    %159 = vector.shape_cast %158 : vector<1x8x256xf32> to vector<8x256xf32>
    %160 = vector.shape_cast %157 : vector<8x256xf32> to vector<1x8x256xf32>
    tpu.vector_store %arg6[%c1_130, %c0_131, %c0_132], %160 {strides = array<i32>} : memref<2x8x256xf32, #tpu.memory_space<vmem>>, vector<1x8x256xf32>,
    return
  }
  func.func @transform_0(%arg0: i32) -> (i32, i32, i32) {
    %c0_i32 = arith.constant 0 : i32
    %c0_i32_0 = arith.constant 0 : i32
    %c0_i32_1 = arith.constant 0 : i32
    return %arg0, %c0_i32, %c0_i32_0 : i32, i32, i32
  }
  func.func @transform_1(%arg0: i32) -> (i32, i32) {
    %c0_i32 = arith.constant 0 : i32
    %c0_i32_0 = arith.constant 0 : i32
    %c0_i32_1 = arith.constant 0 : i32
    return %c0_i32, %c0_i32_0 : i32, i32
  }
  func.func @transform_2(%arg0: i32) -> (i32, i32) {
    %c0_i32 = arith.constant 0 : i32
    %c0_i32_0 = arith.constant 0 : i32
    %c0_i32_1 = arith.constant 0 : i32
    return %c0_i32, %c0_i32_0 : i32, i32
  }
  func.func @transform_3(%arg0: i32) -> (i32, i32, i32) {
    %c0_i32 = arith.constant 0 : i32
    %c0_i32_0 = arith.constant 0 : i32
    %c0_i32_1 = arith.constant 0 : i32
    %c0_i32_2 = arith.constant 0 : i32
    return %c0_i32, %c0_i32_0, %c0_i32_1 : i32, i32, i32
  }
  func.func @transform_4(%arg0: i32) -> (i32, i32) {
    %c0_i32 = arith.constant 0 : i32
    %c0_i32_0 = arith.constant 0 : i32
    %c0_i32_1 = arith.constant 0 : i32
    return %c0_i32, %c0_i32_0 : i32, i32
  }
  func.func @transform_5(%arg0: i32) -> (i32, i32, i32) {
    %c0_i32 = arith.constant 0 : i32
    %c0_i32_0 = arith.constant 0 : i32
    %c0_i32_1 = arith.constant 0 : i32
    return %arg0, %c0_i32, %c0_i32_0 : i32, i32, i32
  }
}

</mosaic_0001>

<bundles_post_ra>
// kernel: tpu_custom_call.1
= control target key start
LH: loop header
LB: loop body
LE: loop exit
PB: predicated region body
PF: predicated region fallthrough
CT: control target
= control target key end

     0   :  { %vm73_vm0 = vcmask 64512   ;;  %s2037_s0 = inlined_call_operand.vmem [shape: f32[2,8,256], index: 0, kind: input, shape index: {}]   ;;  %s2038_s1 = inlined_call_operand.vmem [shape: f32[8,8], index: 1, kind: input, shape index: {}]   ;;  %s2039_s2 = inlined_call_operand.vmem [shape: f32[8,1], index: 2, kind: input, shape index: {}]   ;;  %s2040_s3 = inlined_call_operand.vmem [shape: f32[9,8,8], index: 3, kind: input, shape index: {}]   ;;  %s2041_s4 = inlined_call_operand.vmem [shape: f32[8,1], index: 4, kind: input, shape index: {}]   ;;  %s2042_s5 = inlined_call_operand.hbm [shape: f32[2,8,256], index: 5, kind: output, shape index: {}]  }
   0x1   :  { %v65_v0 = vld [vmem:[%s2037_s0] sm:$0xff]  ;;  %v66_v1 = vld [vmem:[%s2037_s0 + $0x8] sm:$0xff] }
   0x2   :  { %v1632_v2 = vld [vmem:[%s2038_s1] sm:$0xff]  ;;  %92 = vmatpush.msra.mxu0 %v65_v0  ;;  %112 = vmatpush.msra.mxu1 %v66_v1 }
   0x3   :  { %v1637_v3 = vld [vmem:[%s2039_s2] sm:$0xff] }
   0x4   :  { %10 = vsyncpa [#allocation4], 0  ;;  %1365 = vmatmul.msk.f32.vlgmr.msra.gmra.mxu0 %vm73_vm0, %v1632_v2  ;;  %1366 = vmatmul.msk.f32.vlgmr.msra.gmra.mxu1 %vm73_vm0, %v1632_v2  ;;  %v1575_v4 = vmov 0   ;;  %v21_v5 = vlaneseq  ;;  %v1576_v10 = vmov 0.0   ;;  %s1577_s1 = smov 18   ;;  %s1578_s2 = smov 17  }
   0x5   :  { %1441 = vset.pattern.permute.xlu0 %v1575_v4  ;;  %1467 = vset.pattern.permute.xlu2 %v1575_v4  ;;  %s1579_s26 = smov 16   ;;  %vm60_vm5 = vcmask 138240   ;;  %vm62_vm6 = vcmask 277640   ;;  %vm127_vm7 = vcmask 1047688   ;;  %vm451_vm8 = vcmask 146432   ;;  %s1580_s27 = smov 112  }
   0x6   :  { %70 = vperm.xlu0 %1441, %v1637_v3   ;;  %1548 = vset.pattern.permute.xlu1 %v1575_v4  ;;  %v22_v6 = vand.u32 127, %v21_v5  ;;  %63 = vst.msk [vmem:[#allocation2 + $0x10] sm:$0xff] %vm62_vm6, %v1576_v10  ;;  %vm320_vm9 = vcmask 130048   ;;  %s1581_s28 = smov 110   ;;  %s1582_s29 = smov 95   ;;  %v1718_v46 = vld [vmem:[%s2040_s3] sm:$0xff] }
   0x7   :  { %61 = vst.msk [vmem:[#allocation2] sm:$0xff] %vm60_vm5, %v1576_v10  ;;  %s1583_s30 = smov 2   ;;  %s1584_s6 = smov 32   ;;  %vm339_vm10 = vcmask 916480   ;;  %v1727_v50 = vld [vmem:[%s2040_s3 + $0x18] sm:$0xff]  ;;  %vm470_vm11 = vcmask 900096  }
   0x8   :  { %v23_v7 = vadd.s32 128, %v22_v6  ;;  %v28_v8 = vand.u32 15, %v22_v6  ;;  %s1585_s7 = smov 34   ;;  %s1586_s8 = smov 127   ;;  %v1742_v60 = vld [vmem:[%s2040_s3 + $0x28] sm:$0xff]  ;;  %vm601_vm12 = vcmask 777216  }
   0x9   :  { %v1393_v4 = vld [vmem:[%s2037_s0 + $0x10] sm:$0xff]  ;;  %v1394_v5 = vld [vmem:[%s2037_s0 + $0x18] sm:$0xff]  ;;  %vm148_vm13 = vcmask 1039360   ;;  %vm524_vm14 = vcmask 261120   ;;  %s1587_s22 = smov 126   ;;  %s1588_s23 = smov 96  }
   0xa   :  { %v35_v9 = vand.u32 15, %v23_v7  ;;  %vm54_vm1 = vcmp.ne.s32.totalorder %v28_v8, 15  ;;  %vm48_vm3 = vcmp.ne.s32.totalorder %v28_v8, 0  ;;  %s1589_s24 = smov 94   ;;  %vm245_vm15 = vcmask 15360   ;;  %s1590_s25 = smov 111  }
   0xb   :  { %v1363_v11 = vsel %vm54_vm1, 1.0, %v1576_v10  ;;  %v1649_v19 = vsel %vm48_vm3, 1.0, %v1576_v10  ;;  %vm655_vm1 = vcmask 277504   ;;  %vm397_vm3 = vcmask 908288   ;;  %s1349_s12 = sshll.u32 %s2042_s5, 4  ;;  %s1592_s13 = smov 256   ;;  %s1350_s12 = int_to_ptr.hbm [resolvable:$true] %s1349_s12 }
   0xc   :  { %vm55_vm2 = vcmp.ne.s32.totalorder %v35_v9, 15  ;;  %vm49_vm4 = vcmp.ne.s32.totalorder %v35_v9, 0  ;;  %v1763_v9 = vld [vmem:[%s2040_s3 + $0x38] sm:$0xff] }
   0xd   :  { %v1364_v12 = vsel %vm55_vm2, 1.0, %v1576_v10  ;;  %v1651_v20 = vsel %vm49_vm4, 1.0, %v1576_v10  ;;  %vm264_vm2 = vcmask 1031168   ;;  %vm543_vm4 = vcmask 785408  }
   0xe   :  { %v1644_v13 = vpack.i.bf16 %v1364_v12, %v1363_v11  ;;  %v1442_v21 = vpack.i.bf16 %v1651_v20, %v1649_v19  ;;  %v1770_v12 = vld [vmem:[%s2040_s3 + $0x8] sm:$0xff] }
  0x10   :  { %1448 = vrot.lane.b32.xlu2 %v1644_v13, %s1577_s1 }
  0x6a   :  { %v1449_v22 = vpop.permute.xlu2 %1448 }
  0x6b   :  { %v1664_v27 = vunpack.i.h.bf16 %v1449_v22  ;;  %v1666_v28 = vunpack.i.l.bf16 %v1449_v22 }
  0x6d   :  { %v1670_v29 = vsel %vm451_vm8, %v1666_v28, %v1664_v27 }
  0x78   :  { %v71_v14 = vpop.permute.xlu0 %70 }
  0x81   :  { %v94_v15 = vpop.f32.mrf.mxu0  ;;  %v114_v16 = vpop.f32.mrf.mxu1 }
  0x82   :  { %v95_v17 = vadd.f32 %v94_v15, %v71_v14  ;;  %v115_v18 = vadd.f32 %v114_v16, %v71_v14 }
  0x84   :  { %121 = vrot.lane.b32.xlu1 %v115_v18, %s1578_s2  ;;  %119 = vrot.lane.b32.xlu0 %v95_v17, %s1578_s2 }
  0x8c   :  { %1443 = vrot.lane.b32.xlu1 %v1442_v21, %s1579_s26 }
  0xf6   :  { %v122_v23 = vpop.permute.xlu1 %121  ;;  %v120_v24 = vpop.permute.xlu0 %119 }
  0xf7   :  { %130 = vst.msk [vmem:[#allocation2 + $0x10] sm:$0xff] %vm60_vm5, %v122_v23  ;;  %v1659_v25 = vsel %vm60_vm5, %v120_v24, %v122_v23 }
  0xf8   :  { %128 = vst.msk [vmem:[#allocation2] sm:$0xff] %vm127_vm7, %v120_v24  ;;  %v134_v26 = vmul.f32 %v1651_v20, %v1659_v25  ;;  %v457_v37 = vmul.f32 %v1670_v29, %v1659_v25 }
  0xfa   :  { %234 = vmatpush.msrb.mxu1 %v134_v26 }
  0xfb   :  { %1371 = vmatmul.msk.f32.vlgmr.msrb.gmra.mxu1 %vm73_vm0, %v1718_v46 }
  0xfe   :  { %v1444_v30 = vpop.permute.xlu1 %1443  ;;  %v1680_v35 = vld [vmem:[#allocation2 + $0x10] sm:$0xff] }
  0xff   :  { %v1672_v31 = vunpack.i.h.bf16 %v1444_v30  ;;  %v1674_v32 = vunpack.i.l.bf16 %v1444_v30  ;;  %v1676_v33 = vld [vmem:[#allocation2] sm:$0xff]  ;;  %v458_v45 = vmul.f32 %v1664_v27, %v1680_v35 }
 0x100   :  { %v133_v34 = vmul.f32 %v1649_v19, %v1676_v33  ;;  %v456_v36 = vmul.f32 %v1666_v28, %v1676_v33  ;;  %v1701_v44 = vpack.i.bf16 %v1659_v25, %v1676_v33 }
 0x101   :  { %v1688_v38 = vsel %vm320_vm9, %v1674_v32, %v1672_v31  ;;  %v327_v39 = vmul.f32 %v1672_v31, %v1680_v35  ;;  %v325_v40 = vmul.f32 %v1674_v32, %v1676_v33 }
 0x102   :  { %214 = vmatpush.msrb.mxu0 %v133_v34  ;;  %v1462_v41 = vpack.i.bf16 %v457_v37, %v456_v36  ;;  %v326_v42 = vmul.f32 %v1688_v38, %v1659_v25 }
 0x103   :  { %337 = vrot.lane.b32.xlu0 %v327_v39, %s1580_s27  ;;  %1370 = vmatmul.msk.f32.vlgmr.msrb.gmra.mxu0 %vm73_vm0, %v1718_v46 }
 0x104   :  { %1463 = vrot.lane.b32.xlu1 %v1462_v41, %s1581_s28  ;;  %v1452_v43 = vpack.i.bf16 %v326_v42, %v325_v40 }
 0x106   :  { %1453 = vrot.lane.b32.xlu2 %v1452_v43, %s1580_s27 }
 0x10b   :  { %1458 = vrot.lane.b32.xlu0 %v1701_v44, %s1582_s29 }
 0x10c   :  { %599 = vrot.lane.b32.xlu1 %v1680_v35, %s1582_s29 }
 0x10e   :  { %468 = vrot.lane.b32.xlu2 %v458_v45, %s1581_s28 }
 0x113   :  { %1469 = vrot.lane.b32.xlu0 %v1644_v13, %s1583_s30 }
 0x114   :  { %1474 = vrot.lane.b32.xlu1 %v1442_v21, %s1584_s6 }
 0x116   :  { %743 = vperm.xlu2 %1467, %v1637_v3  }
 0x11e   :  { %1479 = vrot.lane.b32.xlu2 %v1644_v13, %s1585_s7 }
 0x126   :  { %1484 = vrot.lane.b32.xlu2 %v1701_v44, %s1586_s8 }
 0x160   :  { %v1454_v47 = vpop.permute.xlu2 %1453 }
 0x161   :  { %v1456_v48 = vunpack.i.h.bf16 %v1454_v47  ;;  %v1455_v49 = vunpack.i.l.bf16 %v1454_v47 }
 0x163   :  { %v340_v51 = vsel %vm339_vm10, %v1455_v49, %v1456_v48 }
 0x164   :  { %362 = vmatpush.msra.mxu0 %v340_v51 }
 0x165   :  { %1376 = vmatmul.msk.f32.vlgmr.msra.gmra.mxu0 %vm73_vm0, %v1727_v50 }
 0x168   :  { %v469_v52 = vpop.permute.xlu2 %468 }
 0x170   :  { %v1732_v53 = vpop.permute.xlu2 %743 }
 0x175   :  { %v338_v54 = vpop.permute.xlu0 %337 }
 0x176   :  { %v341_v55 = vsel %vm339_vm10, %v1456_v48, %v338_v54  ;;  %v1464_v56 = vpop.permute.xlu1 %1463 }
 0x177   :  { %v1466_v57 = vunpack.i.h.bf16 %v1464_v56  ;;  %v1465_v58 = vunpack.i.l.bf16 %v1464_v56  ;;  %382 = vmatpush.msra.mxu1 %v341_v55 }
 0x178   :  { %v1735_v59 = vpop.permute.xlu2 %1479  ;;  %1377 = vmatmul.msk.f32.vlgmr.msra.gmra.mxu1 %vm73_vm0, %v1727_v50  ;;  %v1811_v37 = vpop.f32.mrf.mxu1 }
 0x179   :  { %v471_v61 = vsel %vm470_vm11, %v1465_v58, %v1466_v57  ;;  %v472_v62 = vsel %vm470_vm11, %v1466_v57, %v469_v52  ;;  %v1804_v30 = vunpack.i.h.bf16 %v1735_v59  ;;  %v1836_v57 = vunpack.i.l.bf16 %v1735_v59 }
 0x17a   :  { %493 = vmatpush.msrb.mxu0 %v471_v61  ;;  %513 = vmatpush.msrb.mxu1 %v472_v62 }
 0x17b   :  { %1382 = vmatmul.msk.f32.vlgmr.msrb.gmra.mxu0 %vm73_vm0, %v1742_v60  ;;  %v662_v34 = vmul.f32 %v1804_v30, %v1680_v35  ;;  %v660_v61 = vmul.f32 %v1836_v57, %v1676_v33 }
 0x17d   :  { %v1459_v63 = vpop.permute.xlu0 %1458 }
 0x17e   :  { %v1461_v0 = vunpack.i.h.bf16 %v1459_v63  ;;  %v1460_v1 = vunpack.i.l.bf16 %v1459_v63  ;;  %v600_v3 = vpop.permute.xlu1 %599 }
 0x180   :  { %v603_v6 = vsel %vm601_vm12, %v1461_v0, %v600_v3  ;;  %v1755_v7 = vpop.permute.xlu2 %1484  ;;  %1383 = vmatmul.msk.f32.vlgmr.msrb.gmra.mxu1 %vm73_vm0, %v1742_v60  ;;  %v602_v8 = vsel %vm601_vm12, %v1460_v1, %v1461_v0  ;;  %v1809_v36 = vpop.f32.mrf.mxu0 }
 0x181   :  { %v1487_v10 = vunpack.i.h.bf16 %v1755_v7  ;;  %v1486_v11 = vunpack.i.l.bf16 %v1755_v7  ;;  %624 = vmatpush.msra.mxu0 %v602_v8  ;;  %644 = vmatpush.msra.mxu1 %v603_v6 }
 0x183   :  { %764 = vmatpush.msrb.mxu0 %v1393_v4  ;;  %784 = vmatpush.msrb.mxu1 %v1394_v5  ;;  %v149_v13 = vsel %vm148_vm13, %v1486_v11, %v1487_v10 }
 0x184   :  { %1388 = vmatmul.msk.f32.vlgmr.msra.gmra.mxu0 %vm73_vm0, %v1763_v9  ;;  %171 = vmatpush.msra.mxu2 %v149_v13 }
 0x185   :  { %v1470_v14 = vpop.permute.xlu0 %1469  ;;  %1368 = vmatmul.msk.f32.vlgmr.msra.gmra.mxu2 %vm73_vm0, %v1770_v12 }
 0x186   :  { %v1779_v15 = vunpack.i.h.bf16 %v1470_v14  ;;  %v1475_v16 = vpop.permute.xlu1 %1474  ;;  %v1471_v48 = vunpack.i.l.bf16 %v1470_v14 }
 0x187   :  { %v1781_v17 = vunpack.i.h.bf16 %v1475_v16  ;;  %v1783_v18 = vunpack.i.l.bf16 %v1475_v16  ;;  %v1890_v16 = vld [vmem:[%s2040_s3 + $0x10] sm:$0xff] }
 0x188   :  { %1389 = vmatmul.msk.f32.vlgmr.msra.gmra.mxu1 %vm73_vm0, %v1763_v9  ;;  %v252_v21 = vmul.f32 %v1779_v15, %v1680_v35  ;;  %v246_v52 = vsel %vm245_vm15, %v1471_v48, %v1779_v15  ;;  %v250_v54 = vmul.f32 %v1471_v48, %v1676_v33 }
 0x189   :  { %v1791_v22 = vsel %vm524_vm14, %v1783_v18, %v1781_v17  ;;  %v529_v23 = vmul.f32 %v1783_v18, %v1676_v33  ;;  %v251_v55 = vmul.f32 %v246_v52, %v1659_v25  ;;  %v531_v58 = vmul.f32 %v1781_v17, %v1680_v35 }
 0x18a   :  { %262 = vrot.lane.b32.xlu2 %v252_v21, %s1587_s22  ;;  %v530_v24 = vmul.f32 %v1791_v22, %v1659_v25 }
 0x18b   :  { %v1488_v56 = vpack.i.bf16 %v251_v55, %v250_v54 }
 0x18c   :  { %1395 = vmatmul.msk.f32.vlgmr.msrb.gmra.mxu0 %vm73_vm0, %v1632_v2  ;;  %v1498_v26 = vpack.i.bf16 %v530_v24, %v529_v23 }
 0x190   :  { %1396 = vmatmul.msk.f32.vlgmr.msrb.gmra.mxu1 %vm73_vm0, %v1632_v2 }
 0x192   :  { %1499 = vrot.lane.b32.xlu2 %v1498_v26, %s1588_s23 }
 0x19a   :  { %672 = vrot.lane.b32.xlu2 %v662_v34, %s1589_s24 }
 0x1e2   :  { %v1813_v39 = vpop.f32.mrf.mxu0 }
 0x1e4   :  { %v263_v63 = vpop.permute.xlu2 %262 }
 0x1ec   :  { %v1500_v11 = vpop.permute.xlu2 %1499 }
 0x1ed   :  { %v1502_v14 = vunpack.i.h.bf16 %v1500_v11  ;;  %v1501_v21 = vunpack.i.l.bf16 %v1500_v11 }
 0x1f5   :  { %v1815_v2 = vpop.f32.mrf.mxu1 }
 0x1f8   :  { %v1817_v40 = vpop.f32.mrf.mxu0 }
 0x1fd   :  { %v1819_v41 = vpop.f32.mrf.mxu1 }
 0x201   :  { %v1821_v42 = vpop.f32.mrf.mxu0 }
 0x205   :  { %v1823_v43 = vpop.f32.mrf.mxu1 }
 0x209   :  { %v766_v45 = vpop.f32.mrf.mxu0 }
 0x20a   :  { %v767_v47 = vadd.f32 %v766_v45, %v1732_v53 }
 0x20c   :  { %791 = vrot.lane.b32.xlu0 %v767_v47, %s1578_s2 }
 0x20d   :  { %v786_v49 = vpop.f32.mrf.mxu1 }
 0x20e   :  { %v787_v51 = vadd.f32 %v786_v49, %v1732_v53  ;;  %v1842_v53 = vsel %vm655_vm1, %v1836_v57, %v1804_v30 }
 0x20f   :  { %v661_v59 = vmul.f32 %v1842_v53, %v1659_v25 }
 0x210   :  { %793 = vrot.lane.b32.xlu1 %v787_v51, %s1578_s2 }
 0x214   :  { %146 = vrot.lane.b32.xlu0 %v1680_v35, %s1586_s8 }
 0x218   :  { %1489 = vrot.lane.b32.xlu1 %v1488_v56, %s1587_s22 }
 0x21c   :  { %1494 = vrot.lane.b32.xlu0 %v1701_v44, %s1590_s25  ;;  %v1503_v44 = vpack.i.bf16 %v661_v59, %v660_v61 }
 0x220   :  { %395 = vrot.lane.b32.xlu1 %v1680_v35, %s1590_s25 }
 0x224   :  { %541 = vrot.lane.b32.xlu0 %v531_v58, %s1588_s23 }
 0x228   :  { %1504 = vrot.lane.b32.xlu1 %v1503_v44, %s1589_s24 }
 0x27e   :  { %v792_v62 = vpop.permute.xlu0 %791 }
 0x27f   :  { %799 = vst.msk [vmem:[#allocation2] sm:$0xff] %vm127_vm7, %v792_v62 }
 0x282   :  { %v794_v0 = vpop.permute.xlu1 %793 }
 0x283   :  { %v1856_v1 = vsel %vm60_vm5, %v792_v62, %v794_v0  ;;  %801 = vst.msk [vmem:[#allocation2 + $0x10] sm:$0xff] %vm60_vm5, %v794_v0  ;;  %vm674_vm5 = vcmask 769024  }
 0x284   :  { %v805_v33 = vmul.f32 %v1651_v20, %v1856_v1  ;;  %v909_v25 = vmul.f32 %v1856_v1, %v246_v52  ;;  %v1151_v54 = vmul.f32 %v1856_v1, %v1791_v22  ;;  %v971_v62 = vmul.f32 %v1856_v1, %v1688_v38 }
 0x286   :  { %v147_v35 = vpop.permute.xlu0 %146  ;;  %v1862_v3 = vld [vmem:[#allocation2] sm:$0xff]  ;;  %903 = vmatpush.msra.mxu1 %v805_v33 }
 0x287   :  { %v150_v4 = vsel %vm148_vm13, %v1487_v10, %v147_v35  ;;  %v804_v5 = vmul.f32 %v1649_v19, %v1862_v3  ;;  %v1871_v6 = vpack.i.bf16 %v1856_v1, %v1862_v3  ;;  %v908_v8 = vmul.f32 %v1471_v48, %v1862_v3  ;;  %1401 = vmatmul.msk.f32.vlgmr.msra.gmra.mxu1 %vm73_vm0, %v1718_v46 }
 0x288   :  { %191 = vmatpush.msra.mxu3 %v150_v4  ;;  %v544_v48 = vsel %vm543_vm4, %v1501_v21, %v1502_v14  ;;  %v1150_v52 = vmul.f32 %v1783_v18, %v1862_v3  ;;  %v1089_v35 = vmul.f32 %v1856_v1, %v1670_v29  ;;  %v1269_v29 = vmul.f32 %v1856_v1, %v1842_v53 }
 0x289   :  { %1369 = vmatmul.msk.f32.vlgmr.msra.gmra.mxu3 %vm73_vm0, %v1770_v12  ;;  %883 = vmatpush.msra.mxu0 %v804_v5  ;;  %v1518_v20 = vpack.i.bf16 %v909_v25, %v908_v8  ;;  %v1088_v25 = vmul.f32 %v1666_v28, %v1862_v3  ;;  %v1268_v28 = vmul.f32 %v1836_v57, %v1862_v3  ;;  %v1960_v5 = vld [vmem:[%s2040_s3 + $0x40] sm:$0xff] }
 0x28a   :  { %1509 = vrot.lane.b32.xlu0 %v1871_v6, %s1586_s8  ;;  %v1490_v7 = vpop.permute.xlu1 %1489  ;;  %v1878_v10 = vld [vmem:[#allocation2 + $0x10] sm:$0xff]  ;;  %1400 = vmatmul.msk.f32.vlgmr.msra.gmra.mxu0 %vm73_vm0, %v1718_v46  ;;  %v1528_v61 = vpack.i.bf16 %v1151_v54, %v1150_v52  ;;  %v1330_v57 = vld [vmem:[%s2041_s4] sm:$0xff]  ;;  %s1591_s4 = smov [#allocation3]  }
 0x28b   :  { %1519 = vrot.lane.b32.xlu2 %v1518_v20, %s1587_s22  ;;  %v1492_v19 = vunpack.i.h.bf16 %v1490_v7  ;;  %v1491_v13 = vunpack.i.l.bf16 %v1490_v7  ;;  %816 = vrot.lane.b32.xlu1 %v1878_v10, %s1586_s8  ;;  %v910_v46 = vmul.f32 %v1779_v15, %v1878_v10  ;;  %v1911_v15 = vld [vmem:[%s2040_s3 + $0x20] sm:$0xff]  ;;  %v1152_v58 = vmul.f32 %v1781_v17, %v1878_v10 }
 0x28c   :  { %v972_v18 = vmul.f32 %v1672_v31, %v1878_v10  ;;  %v970_v17 = vmul.f32 %v1674_v32, %v1862_v3  ;;  %v1936_v31 = vld [vmem:[%s2040_s3 + $0x30] sm:$0xff]  ;;  %v1090_v38 = vmul.f32 %v1664_v27, %v1878_v10  ;;  %v1533_v4 = vpack.i.bf16 %v1089_v35, %v1088_v25 }
 0x28d   :  { %v265_v24 = vsel %vm264_vm2, %v1491_v13, %v1492_v19  ;;  %v266_v26 = vsel %vm264_vm2, %v1492_v19, %v263_v63  ;;  %v673_v63 = vpop.permute.xlu2 %672  ;;  %v1543_v27 = vpack.i.bf16 %v1269_v29, %v1268_v28  ;;  %v1270_v8 = vmul.f32 %v1804_v30, %v1878_v10 }
 0x28e   :  { %v1495_v23 = vpop.permute.xlu0 %1494  ;;  %287 = vmatpush.msrb.mxu2 %v265_v24  ;;  %307 = vmatpush.msrb.mxu3 %v266_v26  ;;  %v1523_v32 = vpack.i.bf16 %v971_v62, %v970_v17 }
 0x28f   :  { %v1497_v34 = vunpack.i.h.bf16 %v1495_v23  ;;  %v1496_v45 = vunpack.i.l.bf16 %v1495_v23  ;;  %1373 = vmatmul.msk.f32.vlgmr.msrb.gmra.mxu2 %vm73_vm0, %v1890_v16 }
 0x291   :  { %1374 = vmatmul.msk.f32.vlgmr.msrb.gmra.mxu3 %vm73_vm0, %v1890_v16  ;;  %v398_v47 = vsel %vm397_vm3, %v1496_v45, %v1497_v34 }
 0x292   :  { %420 = vmatpush.msra.mxu2 %v398_v47  ;;  %919 = vrot.lane.b32.xlu0 %v910_v46, %s1587_s22  ;;  %v396_v49 = vpop.permute.xlu1 %395 }
 0x293   :  { %1037 = vrot.lane.b32.xlu2 %v1878_v10, %s1590_s25  ;;  %v399_v51 = vsel %vm397_vm3, %v1497_v34, %v396_v49  ;;  %1514 = vrot.lane.b32.xlu1 %v1871_v6, %s1590_s25 }
 0x294   :  { %566 = vmatpush.msrb.mxu2 %v544_v48  ;;  %440 = vmatpush.msra.mxu3 %v399_v51  ;;  %v173_v51 = vpop.f32.mrf.mxu2 }
 0x295   :  { %v217_v25 = vadd.f32 %v1809_v36, %v173_v51 }
 0x296   :  { %v542_v55 = vpop.permute.xlu0 %541 }
 0x297   :  { %v545_v56 = vsel %vm543_vm4, %v1502_v14, %v542_v55  ;;  %1379 = vmatmul.msk.f32.vlgmr.msra.gmra.mxu2 %vm73_vm0, %v1911_v15 }
 0x298   :  { %586 = vmatpush.msrb.mxu3 %v545_v56 }
 0x299   :  { %1380 = vmatmul.msk.f32.vlgmr.msra.gmra.mxu3 %vm73_vm0, %v1911_v15 }
 0x29a   :  { %1161 = vrot.lane.b32.xlu0 %v1152_v58, %s1588_s23  ;;  %v1505_v22 = vpop.permute.xlu1 %1504 }
 0x29b   :  { %1529 = vrot.lane.b32.xlu2 %v1528_v61, %s1588_s23  ;;  %v1507_v59 = vunpack.i.h.bf16 %v1505_v22  ;;  %v1506_v44 = vunpack.i.l.bf16 %v1505_v22  ;;  %981 = vrot.lane.b32.xlu1 %v972_v18, %s1580_s27 }
 0x29d   :  { %v675_v0 = vsel %vm674_vm5, %v1506_v44, %v1507_v59  ;;  %v676_v33 = vsel %vm674_vm5, %v1507_v59, %v673_v63 }
 0x29e   :  { %697 = vmatpush.msra.mxu2 %v675_v0  ;;  %717 = vmatpush.msra.mxu3 %v676_v33 }
 0x29f   :  { %1385 = vmatmul.msk.f32.vlgmr.msrb.gmra.mxu2 %vm73_vm0, %v1936_v31 }
 0x2a1   :  { %1386 = vmatmul.msk.f32.vlgmr.msrb.gmra.mxu3 %vm73_vm0, %v1936_v31 }
 0x2a2   :  { %1524 = vrot.lane.b32.xlu0 %v1523_v32, %s1580_s27 }
 0x2a3   :  { %1099 = vrot.lane.b32.xlu2 %v1090_v38, %s1581_s28  ;;  %1534 = vrot.lane.b32.xlu1 %v1533_v4, %s1581_s28  ;;  %s1347_s28 = sshll.u32 %s1591_s4, 4  ;;  %s1348_s28 = int_to_ptr.vmem [resolvable:$true] %s1347_s28 }
 0x2a7   :  { %1391 = vmatmul.msk.f32.vlgmr.msra.gmra.mxu2 %vm73_vm0, %v1960_v5 }
 0x2a9   :  { %1392 = vmatmul.msk.f32.vlgmr.msra.gmra.mxu3 %vm73_vm0, %v1960_v5 }
 0x2aa   :  { %1544 = vrot.lane.b32.xlu0 %v1543_v27, %s1589_s24 }
 0x2ab   :  { %1539 = vrot.lane.b32.xlu2 %v1871_v6, %s1582_s29  ;;  %1279 = vrot.lane.b32.xlu1 %v1270_v8, %s1589_s24 }
 0x2b2   :  { %1217 = vrot.lane.b32.xlu0 %v1878_v10, %s1582_s29 }
 0x2b3   :  { %1333 = vperm.xlu2 %1467, %v1330_v57   ;;  %727 = vperm.xlu1 %1548, %v1330_v57  }
 0x2e5   :  { %v1520_v53 = vpop.permute.xlu2 %1519 }
 0x2e6   :  { %v1522_v30 = vunpack.i.h.bf16 %v1520_v53  ;;  %v1521_v20 = vunpack.i.l.bf16 %v1520_v53 }
 0x2e8   :  { %v921_v10 = vsel %vm264_vm2, %v1521_v20, %v1522_v30 }
 0x2ed   :  { %v1038_v1 = vpop.permute.xlu2 %1037 }
 0x2f5   :  { %v1530_v6 = vpop.permute.xlu2 %1529 }
 0x2f6   :  { %v1532_v24 = vunpack.i.h.bf16 %v1530_v6  ;;  %v1531_v26 = vunpack.i.l.bf16 %v1530_v6 }
 0x2fc   :  { %v1510_v3 = vpop.permute.xlu0 %1509 }
 0x2fd   :  { %v1512_v11 = vunpack.i.h.bf16 %v1510_v3  ;;  %v1511_v7 = vunpack.i.l.bf16 %v1510_v3  ;;  %v817_v19 = vpop.permute.xlu1 %816  ;;  %v1100_v47 = vpop.permute.xlu2 %1099 }
 0x2ff   :  { %v818_v13 = vsel %vm148_vm13, %v1511_v7, %v1512_v11  ;;  %v819_v14 = vsel %vm148_vm13, %v1512_v11, %v817_v19 }
 0x300   :  { %840 = vmatpush.msrb.mxu2 %v818_v13  ;;  %860 = vmatpush.msrb.mxu3 %v819_v14 }
 0x301   :  { %1398 = vmatmul.msk.f32.vlgmr.msrb.gmra.mxu2 %vm73_vm0, %v1770_v12  ;;  %1399 = vmatmul.msk.f32.vlgmr.msrb.gmra.mxu3 %vm73_vm0, %v1770_v12  ;;  %v1163_v12 = vsel %vm543_vm4, %v1531_v26, %v1532_v24 }
 0x302   :  { %943 = vmatpush.msra.mxu2 %v921_v10 }
 0x304   :  { %v920_v21 = vpop.permute.xlu0 %919 }
 0x305   :  { %v922_v23 = vsel %vm264_vm2, %v1522_v30, %v920_v21  ;;  %v1515_v34 = vpop.permute.xlu1 %1514  ;;  %v1540_v58 = vpop.permute.xlu2 %1539 }
 0x306   :  { %963 = vmatpush.msra.mxu3 %v922_v23  ;;  %v1517_v45 = vunpack.i.h.bf16 %v1515_v34  ;;  %v1516_v46 = vunpack.i.l.bf16 %v1515_v34  ;;  %v1542_v44 = vunpack.i.h.bf16 %v1540_v58  ;;  %v1541_v17 = vunpack.i.l.bf16 %v1540_v58 }
 0x308   :  { %v1039_v48 = vsel %vm397_vm3, %v1516_v46, %v1517_v45  ;;  %v1040_v49 = vsel %vm397_vm3, %v1517_v45, %v1038_v1  ;;  %v1219_v36 = vsel %vm601_vm12, %v1541_v17, %v1542_v44 }
 0x309   :  { %1403 = vmatmul.msk.f32.vlgmr.msra.gmra.mxu2 %vm73_vm0, %v1890_v16  ;;  %1404 = vmatmul.msk.f32.vlgmr.msra.gmra.mxu3 %vm73_vm0, %v1890_v16 }
 0x30a   :  { %1061 = vmatpush.msrb.mxu2 %v1039_v48  ;;  %1081 = vmatpush.msrb.mxu3 %v1040_v49 }
 0x30c   :  { %1185 = vmatpush.msra.mxu2 %v1163_v12  ;;  %v193_v52 = vpop.f32.mrf.mxu3  ;;  %v1162_v54 = vpop.permute.xlu0 %1161 }
 0x30d   :  { %v1164_v55 = vsel %vm543_vm4, %v1532_v24, %v1162_v54  ;;  %v982_v56 = vpop.permute.xlu1 %981  ;;  %v905_v12 = vpop.f32.mrf.mxu1 }
 0x30e   :  { %1205 = vmatpush.msra.mxu3 %v1164_v55 }
 0x311   :  { %1409 = vmatmul.msk.f32.vlgmr.msrb.gmra.mxu2 %vm73_vm0, %v1911_v15  ;;  %1410 = vmatmul.msk.f32.vlgmr.msrb.gmra.mxu3 %vm73_vm0, %v1911_v15  ;;  %v237_v15 = vadd.f32 %v1811_v37, %v193_v52 }
 0x312   :  { %v289_v16 = vpop.f32.mrf.mxu2 }
 0x313   :  { %v312_v4 = vadd.f32 %v289_v16, %v217_v25 }
 0x314   :  { %v309_v61 = vpop.f32.mrf.mxu3  ;;  %v1525_v18 = vpop.permute.xlu0 %1524 }
 0x315   :  { %v1527_v22 = vunpack.i.h.bf16 %v1525_v18  ;;  %v1526_v59 = vunpack.i.l.bf16 %v1525_v18  ;;  %v1535_v62 = vpop.permute.xlu1 %1534  ;;  %v313_v28 = vadd.f32 %v309_v61, %v237_v15  ;;  %v387_v53 = vadd.f32 %v1813_v39, %v312_v4 }
 0x316   :  { %v1537_v63 = vunpack.i.h.bf16 %v1535_v62  ;;  %v1536_v0 = vunpack.i.l.bf16 %v1535_v62 }
 0x317   :  { %v983_v33 = vsel %vm339_vm10, %v1526_v59, %v1527_v22  ;;  %v984_v35 = vsel %vm339_vm10, %v1527_v22, %v982_v56  ;;  %v388_v1 = vadd.f32 %v1815_v2, %v313_v28 }
 0x318   :  { %1005 = vmatpush.msrb.mxu0 %v983_v33  ;;  %1025 = vmatpush.msrb.mxu1 %v984_v35  ;;  %v1101_v32 = vsel %vm470_vm11, %v1536_v0, %v1537_v63  ;;  %v1102_v38 = vsel %vm470_vm11, %v1537_v63, %v1100_v47 }
 0x319   :  { %1406 = vmatmul.msk.f32.vlgmr.msrb.gmra.mxu0 %vm73_vm0, %v1727_v50  ;;  %1407 = vmatmul.msk.f32.vlgmr.msrb.gmra.mxu1 %vm73_vm0, %v1727_v50 }
 0x31a   :  { %1123 = vmatpush.msra.mxu0 %v1101_v32  ;;  %v422_v29 = vpop.f32.mrf.mxu2  ;;  %1143 = vmatpush.msra.mxu1 %v1102_v38 }
 0x31b   :  { %1415 = vmatmul.msk.f32.vlgmr.msra.gmra.mxu2 %vm73_vm0, %v1936_v31  ;;  %1416 = vmatmul.msk.f32.vlgmr.msra.gmra.mxu3 %vm73_vm0, %v1936_v31  ;;  %v445_v20 = vadd.f32 %v422_v29, %v387_v53  ;;  %v1334_v29 = vpop.permute.xlu2 %1333 }
 0x31c   :  { %1241 = vmatpush.msrb.mxu0 %v1219_v36  ;;  %v442_v37 = vpop.f32.mrf.mxu3  ;;  %v1545_v27 = vpop.permute.xlu0 %1544 }
 0x31d   :  { %v1547_v8 = vunpack.i.h.bf16 %v1545_v27  ;;  %v1546_v57 = vunpack.i.l.bf16 %v1545_v27  ;;  %v1280_v50 = vpop.permute.xlu1 %1279  ;;  %v446_v11 = vadd.f32 %v442_v37, %v388_v1  ;;  %v518_v39 = vadd.f32 %v1817_v40, %v445_v20 }
 0x31f   :  { %v1281_v3 = vsel %vm674_vm5, %v1546_v57, %v1547_v8  ;;  %v1282_v30 = vsel %vm674_vm5, %v1547_v8, %v1280_v50  ;;  %v519_v2 = vadd.f32 %v1819_v41, %v446_v11 }
 0x320   :  { %1303 = vmatpush.msrb.mxu2 %v1281_v3  ;;  %1323 = vmatpush.msrb.mxu3 %v1282_v30 }
 0x321   :  { %1412 = vmatmul.msk.f32.vlgmr.msra.gmra.mxu0 %vm73_vm0, %v1742_v60  ;;  %1413 = vmatmul.msk.f32.vlgmr.msra.gmra.mxu1 %vm73_vm0, %v1742_v60 }
 0x322   :  { %v568_v31 = vpop.f32.mrf.mxu2 }
 0x323   :  { %1421 = vmatmul.msk.f32.vlgmr.msrb.gmra.mxu2 %vm73_vm0, %v1960_v5  ;;  %1422 = vmatmul.msk.f32.vlgmr.msrb.gmra.mxu3 %vm73_vm0, %v1960_v5  ;;  %v591_v13 = vadd.f32 %v568_v31, %v518_v39 }
 0x324   :  { %v588_v7 = vpop.f32.mrf.mxu3  ;;  %v1218_v19 = vpop.permute.xlu0 %1217 }
 0x325   :  { %v1220_v6 = vsel %vm601_vm12, %v1542_v44, %v1218_v19  ;;  %v592_v14 = vadd.f32 %v588_v7, %v519_v2  ;;  %v649_v60 = vadd.f32 %v1821_v42, %v591_v13  ;;  %v728_v21 = vpop.permute.xlu1 %727  ;;  %v885_v42 = vpop.f32.mrf.mxu0 }
 0x326   :  { %1261 = vmatpush.msrb.mxu1 %v1220_v6 }
 0x327   :  { %v650_v10 = vadd.f32 %v1823_v43, %v592_v14 }
 0x329   :  { %1418 = vmatmul.msk.f32.vlgmr.msrb.gmra.mxu0 %vm73_vm0, %v1763_v9  ;;  %1419 = vmatmul.msk.f32.vlgmr.msrb.gmra.mxu1 %vm73_vm0, %v1763_v9 }
 0x32a   :  { %v699_v40 = vpop.f32.mrf.mxu2 }
 0x32b   :  { %v722_v5 = vadd.f32 %v699_v40, %v649_v60 }
 0x32c   :  { %v719_v23 = vpop.f32.mrf.mxu3 }
 0x32d   :  { %v723_v41 = vadd.f32 %v719_v23, %v650_v10  ;;  %v730_v24 = vadd.f32 %v728_v21, %v722_v5 }
 0x32f   :  { %v731_v26 = vadd.f32 %v728_v21, %v723_v41  ;;  %v732_v34 = vmax.f32 %v730_v24, 0.0 }
 0x331   :  { %v733_v45 = vmax.f32 %v731_v26, 0.0  ;;  %734 = vst [vmem:[#allocation3] sm:$0xff] %v732_v34 }
 0x333   :  { %735 = vst [vmem:[#allocation3 + $0x8] sm:$0xff] %v733_v45 }
 0x384   :  { %v842_v46 = vpop.f32.mrf.mxu2  ;;  %v862_v47 = vpop.f32.mrf.mxu3 }
 0x385   :  { %v886_v43 = vadd.f32 %v885_v42, %v842_v46  ;;  %v906_v55 = vadd.f32 %v905_v12, %v862_v47 }
 0x38c   :  { %v945_v48 = vpop.f32.mrf.mxu2  ;;  %v965_v49 = vpop.f32.mrf.mxu3 }
 0x38d   :  { %v968_v56 = vadd.f32 %v945_v48, %v886_v43  ;;  %v969_v58 = vadd.f32 %v965_v49, %v906_v55 }
 0x394   :  { %v1063_v9 = vpop.f32.mrf.mxu2  ;;  %v1083_v52 = vpop.f32.mrf.mxu3 }
 0x396   :  { %v1007_v51 = vpop.f32.mrf.mxu0  ;;  %v1027_v54 = vpop.f32.mrf.mxu1 }
 0x397   :  { %v1030_v16 = vadd.f32 %v1007_v51, %v968_v56  ;;  %v1031_v61 = vadd.f32 %v1027_v54, %v969_v58 }
 0x399   :  { %v1086_v22 = vadd.f32 %v1063_v9, %v1030_v16  ;;  %v1087_v17 = vadd.f32 %v1083_v52, %v1031_v61 }
 0x39e   :  { %v1125_v18 = vpop.f32.mrf.mxu0  ;;  %v1145_v59 = vpop.f32.mrf.mxu1 }
 0x39f   :  { %v1187_v44 = vpop.f32.mrf.mxu2  ;;  %v1207_v62 = vpop.f32.mrf.mxu3  ;;  %v1148_v63 = vadd.f32 %v1125_v18, %v1086_v22  ;;  %v1149_v0 = vadd.f32 %v1145_v59, %v1087_v17 }
 0x3a1   :  { %v1210_v33 = vadd.f32 %v1187_v44, %v1148_v63  ;;  %v1211_v25 = vadd.f32 %v1207_v62, %v1149_v0 }
 0x3a6   :  { %v1243_v35 = vpop.f32.mrf.mxu0  ;;  %v1263_v32 = vpop.f32.mrf.mxu1 }
 0x3a7   :  { %v1266_v15 = vadd.f32 %v1243_v35, %v1210_v33  ;;  %v1305_v38 = vpop.f32.mrf.mxu2  ;;  %v1267_v4 = vadd.f32 %v1263_v32, %v1211_v25  ;;  %v1325_v36 = vpop.f32.mrf.mxu3 }
 0x3a9   :  { %v1328_v28 = vadd.f32 %v1305_v38, %v1266_v15  ;;  %v1329_v37 = vadd.f32 %v1325_v36, %v1267_v4 }
 0x3ab   :  { %v1336_v27 = vadd.f32 %v1334_v29, %v1328_v28  ;;  %v1337_v8 = vadd.f32 %v1334_v29, %v1329_v37 }
 0x3ad   :  { %v1338_v57 = vmax.f32 %v1336_v27, 0.0  ;;  %v1339_v53 = vmax.f32 %v1337_v8, 0.0 }
 0x3af   :  { %1341 = vst [vmem:[#allocation3 + $0x10] sm:$0xff] %v1338_v57 }
 0x3b0   :  { %1342 = vst [vmem:[#allocation3 + $0x18] sm:$0xff] %v1339_v53 }
 0x3b1   :  { %1355 = dma.vmem_to_hbm [thread:$0]  %s1348_s28, 512, %s1350_s12, [#allocation4], %s1592_s13, %s1592_s13, %s1579_s26  }
 0x3b2   :  { %1573 = dma.done.wait [#allocation4], 512  }
 0x3b3   :  { %1574 = vsyncadd [#allocation4], 4294966784 }
 0x3b4   :  { %1360 = vsyncpa [#allocation4], 1 }

</bundles_post_ra>
